<compile_context>
chip_gen: v7x
topology: tpu7x:2x2x1
jax: 0.10.0
libtpu: 0.0.40
codegen_flags: <defaults>
</compile_context>

<pallas_src>
import numpy as np
import jax
import jax.numpy as jnp
from jax.experimental import pallas as pl
from jax.experimental.pallas import tpu as pltpu

HEAD_PAD = 128  # lane-dense output slab width (multiple of 128)


def actor_critic_kernel(
    # inputs
    x_ref, hx_ref, cx_ref,
    w1_ref, w2_ref, wg_ref, wh_ref, b_ref,
    # outputs
    heads_ref, hxo_ref, cxo_ref,
):
    H = hx_ref.shape[1]
    head_w = heads_ref.shape[1]

    x = x_ref[...]
    hx = hx_ref[...]
    cx = cx_ref[...]

    # packed biases: row 0 = b1[:H], row 1 = b2[:H], row 2 = b_gates[:4H], row 3 = b_heads
    b = b_ref[...]
    b1 = b[0:1, 0:H]
    b2 = b[1:2, 0:H]
    bg = b[2:3, 0:4 * H]
    bh = b[3:4, 0:head_w]

    # fc1 + relu, fc2 + relu
    h1 = jnp.maximum(
        jnp.dot(x, w1_ref[...], preferred_element_type=jnp.float32) + b1, 0.0)
    h2 = jnp.maximum(
        jnp.dot(h1, w2_ref[...], preferred_element_type=jnp.float32) + b2, 0.0)

    # LSTMCell, fully fused: [h2 | hx] @ W_gates + b_gates, gate order i, f, g, o
    zcat = jnp.concatenate([h2, hx], axis=1)                       # [B, 2H]
    gates = jnp.dot(zcat, wg_ref[...],
                    preferred_element_type=jnp.float32) + bg       # [B, 4H]
    i_g = jax.nn.sigmoid(gates[:, 0 * H:1 * H])
    f_g = jax.nn.sigmoid(gates[:, 1 * H:2 * H])
    g_g = jnp.tanh(gates[:, 2 * H:3 * H])
    o_g = jax.nn.sigmoid(gates[:, 3 * H:4 * H])

    c_new = f_g * cx + i_g * g_g
    h_new = o_g * jnp.tanh(c_new)

    # fused output heads: one lane-dense [B, HEAD_PAD] slab (cols 0,1,2:2+A,2+A = heads)
    heads_ref[...] = (jnp.dot(h_new, wh_ref[...],
                              preferred_element_type=jnp.float32) + bh)
    hxo_ref[...] = h_new
    cxo_ref[...] = c_new


def actor_critic_forward(x, hx, cx, packed, n_action):
    B = x.shape[0]
    H = hx.shape[1]
    head_w = packed["w_heads"].shape[1]

    out_shape = (
        jax.ShapeDtypeStruct((B, head_w), jnp.float32),  # fused heads slab
        jax.ShapeDtypeStruct((B, H), jnp.float32),       # hx'
        jax.ShapeDtypeStruct((B, H), jnp.float32),       # cx'
    )
    ordered = (
        x, hx, cx,
        packed["w1"], packed["w2"], packed["w_gates"], packed["w_heads"],
        packed["b_all"],
    )
    heads, hx_new, cx_new = pl.pallas_call(
        actor_critic_kernel,
        out_shape=out_shape,
        in_specs=[pl.BlockSpec(memory_space=pltpu.MemorySpace.VMEM)] * len(ordered),
        out_specs=tuple(pl.BlockSpec(memory_space=pltpu.MemorySpace.VMEM)
                        for _ in out_shape),
        # recurrent state is carried in place: hx -> hx', cx -> cx'
        input_output_aliases={1: 1, 2: 2},
    )(*ordered)

    c1 = heads[:, 0:1]
    c2 = heads[:, 1:2]
    a1 = heads[:, 2:2 + n_action]
    a2 = heads[:, 2 + n_action:3 + n_action]
    return c1, c2, a1, a2, hx_new, cx_new


# ---------------- deterministic parameter construction ----------------

def _linear_weight(key, fan_in, fan_out):
    # mimics weights_init for nn.Linear: uniform(-sqrt(6/(fi+fo)), +)
    bound = float(np.sqrt(6.0 / (fan_in + fan_out)))
    return jax.random.uniform(key, (fan_in, fan_out), jnp.float32, -bound, bound)


def _norm_cols_weight(key, in_dim, out_dim, std):
    # normalized_columns_initializer on a [out, in] torch weight, returned as [in, out]
    w = jax.random.normal(key, (out_dim, in_dim), jnp.float32)
    w = w * std / jnp.sqrt(jnp.sum(w * w, axis=1, keepdims=True))
    return w.T


def make_params(key, state_length, hidden, n_action):
    ks = jax.random.split(key, 16)
    lstm_bound = 1.0 / np.sqrt(hidden)  # PyTorch default LSTMCell weight init

    def lstm_w(k):
        return jax.random.uniform(k, (hidden, hidden), jnp.float32,
                                  -lstm_bound, lstm_bound)

    params = {
        "w1": _linear_weight(ks[0], state_length, hidden),
        "b1": jnp.zeros((1, hidden), jnp.float32),
        "w2": _linear_weight(ks[1], hidden, hidden),
        "b2": jnp.zeros((1, hidden), jnp.float32),
        # LSTMCell input-hidden / hidden-hidden weights, per gate (i, f, g, o)
        "wii": lstm_w(ks[2]), "wif": lstm_w(ks[3]),
        "wig": lstm_w(ks[4]), "wio": lstm_w(ks[5]),
        "whi": lstm_w(ks[6]), "whf": lstm_w(ks[7]),
        "whg": lstm_w(ks[8]), "who": lstm_w(ks[9]),
        # b_ih and b_hh are both zeroed in __init__, fused to one zero bias per gate
        "bi": jnp.zeros((1, hidden), jnp.float32),
        "bf": jnp.zeros((1, hidden), jnp.float32),
        "bg": jnp.zeros((1, hidden), jnp.float32),
        "bo": jnp.zeros((1, hidden), jnp.float32),
        # heads (normalized-columns init, zero bias)
        "wc1": _norm_cols_weight(ks[10], hidden, 1, 1.0),
        "bc1": jnp.zeros((1, 1), jnp.float32),
        "wc2": _norm_cols_weight(ks[11], hidden, 1, 1.0),
        "bc2": jnp.zeros((1, 1), jnp.float32),
        "wa1": _norm_cols_weight(ks[12], hidden, n_action, 0.01),
        "ba1": jnp.zeros((1, n_action), jnp.float32),
        "wa2": _norm_cols_weight(ks[13], hidden, 1, 0.01),
        "ba2": jnp.zeros((1, 1), jnp.float32),
    }
    return params


def pack_params(p, n_action):
    """Pre-pack per-gate / per-head weights into fused, lane-dense matrices (host side)."""
    H = p["w1"].shape[1]

    # LSTM: [2H, 4H] so that [h2 | hx] @ W_gates == h2 @ W_ih + hx @ W_hh
    w_ih = jnp.concatenate([p["wii"], p["wif"], p["wig"], p["wio"]], axis=1)  # [H, 4H]
    w_hh = jnp.concatenate([p["whi"], p["whf"], p["whg"], p["who"]], axis=1)  # [H, 4H]
    w_gates = jnp.concatenate([w_ih, w_hh], axis=0)                           # [2H, 4H]
    b_gates = jnp.concatenate([p["bi"], p["bf"], p["bg"], p["bo"]], axis=1)   # [1, 4H]

    # Heads: [H, 1+1+A+1], zero-padded to HEAD_PAD lanes for an unmasked output store
    n_head_cols = 3 + n_action
    w_heads = jnp.concatenate([p["wc1"], p["wc2"], p["wa1"], p["wa2"]], axis=1)
    w_heads = jnp.pad(w_heads, ((0, 0), (0, HEAD_PAD - n_head_cols)))
    b_heads = jnp.concatenate([p["bc1"], p["bc2"], p["ba1"], p["ba2"]], axis=1)
    b_heads = jnp.pad(b_heads, ((0, 0), (0, HEAD_PAD - n_head_cols)))

    # All biases packed into one [4, W] array; each row starts at lane 0 (aligned).
    W = max(4 * H, HEAD_PAD)

    def row(v):
        return jnp.pad(v, ((0, 0), (0, W - v.shape[1])))

    b_all = jnp.concatenate(
        [row(p["b1"]), row(p["b2"]), row(b_gates), row(b_heads)], axis=0)     # [4, W]

    return {
        "w1": p["w1"], "w2": p["w2"],
        "w_gates": w_gates, "w_heads": w_heads, "b_all": b_all,
    }


def reference_forward(x, hx, cx, p):
    """Pure-JAX reference using the UNFUSED per-gate parameters."""
    h1 = jax.nn.relu(x @ p["w1"] + p["b1"])
    h2 = jax.nn.relu(h1 @ p["w2"] + p["b2"])
    i = jax.nn.sigmoid(h2 @ p["wii"] + hx @ p["whi"] + p["bi"])
    f = jax.nn.sigmoid(h2 @ p["wif"] + hx @ p["whf"] + p["bf"])
    g = jnp.tanh(h2 @ p["wig"] + hx @ p["whg"] + p["bg"])
    o = jax.nn.sigmoid(h2 @ p["wio"] + hx @ p["who"] + p["bo"])
    c_new = f * cx + i * g
    h_new = o * jnp.tanh(c_new)
    return (h_new @ p["wc1"] + p["bc1"], h_new @ p["wc2"] + p["bc2"],
            h_new @ p["wa1"] + p["ba1"], h_new @ p["wa2"] + p["ba2"],
            h_new, c_new)


if __name__ == "__main__":
    # Small shapes implied by the module:
    #   BTC_args.state_length = 16, A3C_args.N_nodes_per_layer = 32, BTC_args.n_action = 4
    B, STATE_LEN, HIDDEN, N_ACTION = 2, 16, 32, 4

    key = jax.random.PRNGKey(0)
    k_param, k_x, k_h, k_c = jax.random.split(key, 4)

    params = make_params(k_param, STATE_LEN, HIDDEN, N_ACTION)
    packed = pack_params(params, N_ACTION)

    x = jax.random.normal(k_x, (B, STATE_LEN), jnp.float32)
    hx = jax.random.normal(k_h, (B, HIDDEN), jnp.float32)
    cx = jax.random.normal(k_c, (B, HIDDEN), jnp.float32)

    # Reference BEFORE the kernel call (hx/cx may be donated via input_output_aliases).
    refs = reference_forward(x, hx, cx, params)
    refs = jax.block_until_ready(refs)

    outs = actor_critic_forward(x, hx, cx, packed, N_ACTION)
    outs = jax.block_until_ready(outs)

    for o, r in zip(outs, refs):
        np.testing.assert_allclose(np.asarray(o), np.asarray(r), rtol=1e-5, atol=1e-5)

    print("KERNEL_OK")
</pallas_src>

<mosaic_0001>
module attributes {stable_mosaic.version = 11 : i64} {
  func.func @actor_critic_kernel(%arg0: memref<2x16xf32, #tpu.memory_space<vmem>>, %arg1: memref<2x32xf32, #tpu.memory_space<vmem>>, %arg2: memref<2x32xf32, #tpu.memory_space<vmem>>, %arg3: memref<16x32xf32, #tpu.memory_space<vmem>>, %arg4: memref<32x32xf32, #tpu.memory_space<vmem>>, %arg5: memref<64x128xf32, #tpu.memory_space<vmem>>, %arg6: memref<32x128xf32, #tpu.memory_space<vmem>>, %arg7: memref<4x128xf32, #tpu.memory_space<vmem>>, %arg8: memref<2x128xf32, #tpu.memory_space<vmem>>, %arg9: memref<2x32xf32, #tpu.memory_space<vmem>>, %arg10: memref<2x32xf32, #tpu.memory_space<vmem>>) attributes {dimension_semantics = [], scalar_prefetch = 0 : i64, scratch_operands = 0 : i64, tpu.core_type = #tpu.core_type<tc>} {
    %c0 = arith.constant 0 : index
    %c0_0 = arith.constant 0 : index
    %0 = vector.load %arg0[%c0, %c0_0] : memref<2x16xf32, #tpu.memory_space<vmem>>, vector<2x16xf32>
    %c0_1 = arith.constant 0 : index
    %c0_2 = arith.constant 0 : index
    %1 = vector.load %arg1[%c0_1, %c0_2] : memref<2x32xf32, #tpu.memory_space<vmem>>, vector<2x32xf32>
    %c0_3 = arith.constant 0 : index
    %c0_4 = arith.constant 0 : index
    %2 = vector.load %arg2[%c0_3, %c0_4] : memref<2x32xf32, #tpu.memory_space<vmem>>, vector<2x32xf32>
    %c0_5 = arith.constant 0 : index
    %c0_6 = arith.constant 0 : index
    %3 = vector.load %arg7[%c0_5, %c0_6] : memref<4x128xf32, #tpu.memory_space<vmem>>, vector<4x128xf32>
    %4 = vector.extract_strided_slice %3 {offsets = [0, 0], sizes = [1, 32], strides = [1, 1]} : vector<4x128xf32> to vector<1x32xf32>
    %5 = vector.extract_strided_slice %3 {offsets = [1, 0], sizes = [1, 32], strides = [1, 1]} : vector<4x128xf32> to vector<1x32xf32>
    %6 = vector.extract_strided_slice %3 {offsets = [2, 0], sizes = [1, 128], strides = [1, 1]} : vector<4x128xf32> to vector<1x128xf32>
    %7 = vector.extract_strided_slice %3 {offsets = [3, 0], sizes = [1, 128], strides = [1, 1]} : vector<4x128xf32> to vector<1x128xf32>
    %c0_7 = arith.constant 0 : index
    %c0_8 = arith.constant 0 : index
    %8 = vector.load %arg3[%c0_7, %c0_8] : memref<16x32xf32, #tpu.memory_space<vmem>>, vector<16x32xf32>
    %cst = arith.constant dense<0.000000e+00> : vector<2x32xf32>
    %9 = tpu.matmul %0, %8, %cst {dimension_numbers = #tpu.dot_dimension_numbers<[1], [0], [0], [1], [0, 0, 1, 1], [], []>} : vector<2x16xf32>, vector<16x32xf32>, vector<2x32xf32> -> vector<2x32xf32>
    %10 = vector.broadcast %4 : vector<1x32xf32> to vector<2x32xf32>
    %11 = arith.addf %9, %10 : vector<2x32xf32>
    %cst_9 = arith.constant 0.000000e+00 : f32
    %12 = vector.broadcast %cst_9 : f32 to vector<2x32xf32>
    %13 = arith.maximumf %11, %12 : vector<2x32xf32>
    %c0_10 = arith.constant 0 : index
    %c0_11 = arith.constant 0 : index
    %14 = vector.load %arg4[%c0_10, %c0_11] : memref<32x32xf32, #tpu.memory_space<vmem>>, vector<32x32xf32>
    %cst_12 = arith.constant dense<0.000000e+00> : vector<2x32xf32>
    %15 = tpu.matmul %13, %14, %cst_12 {dimension_numbers = #tpu.dot_dimension_numbers<[1], [0], [0], [1], [0, 0, 1, 1], [], []>} : vector<2x32xf32>, vector<32x32xf32>, vector<2x32xf32> -> vector<2x32xf32>
    %16 = vector.broadcast %5 : vector<1x32xf32> to vector<2x32xf32>
    %17 = arith.addf %15, %16 : vector<2x32xf32>
    %cst_13 = arith.constant 0.000000e+00 : f32
    %18 = vector.broadcast %cst_13 : f32 to vector<2x32xf32>
    %19 = arith.maximumf %17, %18 : vector<2x32xf32>
    %20 = tpu.concatenate %19, %1 in 1 : vector<2x32xf32>, vector<2x32xf32> -> vector<2x64xf32>
    %c0_14 = arith.constant 0 : index
    %c0_15 = arith.constant 0 : index
    %21 = vector.load %arg5[%c0_14, %c0_15] : memref<64x128xf32, #tpu.memory_space<vmem>>, vector<64x128xf32>
    %cst_16 = arith.constant dense<0.000000e+00> : vector<2x128xf32>
    %22 = tpu.matmul %20, %21, %cst_16 {dimension_numbers = #tpu.dot_dimension_numbers<[1], [0], [0], [1], [0, 0, 1, 1], [], []>} : vector<2x64xf32>, vector<64x128xf32>, vector<2x128xf32> -> vector<2x128xf32>
    %23 = vector.broadcast %6 : vector<1x128xf32> to vector<2x128xf32>
    %24 = arith.addf %22, %23 : vector<2x128xf32>
    %25 = vector.extract_strided_slice %24 {offsets = [0, 0], sizes = [2, 32], strides = [1, 1]} : vector<2x128xf32> to vector<2x32xf32>
    %26 = arith.negf %25 : vector<2x32xf32>
    %27 = math.exp %26 : vector<2x32xf32>
    %cst_17 = arith.constant 1.000000e+00 : f32
    %28 = vector.broadcast %cst_17 : f32 to vector<2x32xf32>
    %29 = arith.addf %28, %27 : vector<2x32xf32>
    %30 = arith.divf %28, %29 : vector<2x32xf32>
    %31 = vector.extract_strided_slice %24 {offsets = [0, 32], sizes = [2, 32], strides = [1, 1]} : vector<2x128xf32> to vector<2x32xf32>
    %32 = arith.negf %31 : vector<2x32xf32>
    %33 = math.exp %32 : vector<2x32xf32>
    %cst_18 = arith.constant 1.000000e+00 : f32
    %34 = vector.broadcast %cst_18 : f32 to vector<2x32xf32>
    %35 = arith.addf %34, %33 : vector<2x32xf32>
    %36 = arith.divf %34, %35 : vector<2x32xf32>
    %37 = vector.extract_strided_slice %24 {offsets = [0, 64], sizes = [2, 32], strides = [1, 1]} : vector<2x128xf32> to vector<2x32xf32>
    %38 = math.tanh %37 : vector<2x32xf32>
    %39 = vector.extract_strided_slice %24 {offsets = [0, 96], sizes = [2, 32], strides = [1, 1]} : vector<2x128xf32> to vector<2x32xf32>
    %40 = arith.negf %39 : vector<2x32xf32>
    %41 = math.exp %40 : vector<2x32xf32>
    %cst_19 = arith.constant 1.000000e+00 : f32
    %42 = vector.broadcast %cst_19 : f32 to vector<2x32xf32>
    %43 = arith.addf %42, %41 : vector<2x32xf32>
    %44 = arith.divf %42, %43 : vector<2x32xf32>
    %45 = arith.mulf %36, %2 : vector<2x32xf32>
    %46 = arith.mulf %30, %38 : vector<2x32xf32>
    %47 = arith.addf %45, %46 : vector<2x32xf32>
    %48 = math.tanh %47 : vector<2x32xf32>
    %49 = arith.mulf %44, %48 : vector<2x32xf32>
    %c0_20 = arith.constant 0 : index
    %c0_21 = arith.constant 0 : index
    %50 = vector.load %arg6[%c0_20, %c0_21] : memref<32x128xf32, #tpu.memory_space<vmem>>, vector<32x128xf32>
    %cst_22 = arith.constant dense<0.000000e+00> : vector<2x128xf32>
    %51 = tpu.matmul %49, %50, %cst_22 {dimension_numbers = #tpu.dot_dimension_numbers<[1], [0], [0], [1], [0, 0, 1, 1], [], []>} : vector<2x32xf32>, vector<32x128xf32>, vector<2x128xf32> -> vector<2x128xf32>
    %52 = vector.broadcast %7 : vector<1x128xf32> to vector<2x128xf32>
    %53 = arith.addf %51, %52 : vector<2x128xf32>
    %c0_23 = arith.constant 0 : index
    %c0_24 = arith.constant 0 : index
    %54 = vector.load %arg8[%c0_23, %c0_24] : memref<2x128xf32, #tpu.memory_space<vmem>>, vector<2x128xf32>
    tpu.vector_store %arg8[%c0_23, %c0_24], %53 {strides = array<i32>} : memref<2x128xf32, #tpu.memory_space<vmem>>, vector<2x128xf32>,
    %c0_25 = arith.constant 0 : index
    %c0_26 = arith.constant 0 : index
    %55 = vector.load %arg9[%c0_25, %c0_26] : memref<2x32xf32, #tpu.memory_space<vmem>>, vector<2x32xf32>
    tpu.vector_store %arg9[%c0_25, %c0_26], %49 {strides = array<i32>} : memref<2x32xf32, #tpu.memory_space<vmem>>, vector<2x32xf32>,
    %c0_27 = arith.constant 0 : index
    %c0_28 = arith.constant 0 : index
    %56 = vector.load %arg10[%c0_27, %c0_28] : memref<2x32xf32, #tpu.memory_space<vmem>>, vector<2x32xf32>
    tpu.vector_store %arg10[%c0_27, %c0_28], %47 {strides = array<i32>} : memref<2x32xf32, #tpu.memory_space<vmem>>, vector<2x32xf32>,
    return
  }
}

</mosaic_0001>

<bundles_post_ra>
// kernel: tpu_custom_call.1
= control target key start
LH: loop header
LB: loop body
LE: loop exit
PB: predicated region body
PF: predicated region fallthrough
CT: control target
= control target key end

     0   :  { %16 = vsyncpa [#allocation3], 0  ;;  %s1053_s0 = inlined_call_operand.vmem [shape: f32[2,16], index: 0, kind: input, shape index: {}]   ;;  %s1054_s1 = inlined_call_operand.hbm [shape: f32[2,32], index: 1, kind: input, shape index: {}, may-alias: {1,9}]   ;;  %s1055_s2 = inlined_call_operand.hbm [shape: f32[2,32], index: 2, kind: input, shape index: {}, may-alias: {2,10}]   ;;  %s1056_s3 = inlined_call_operand.vmem [shape: f32[16,32], index: 3, kind: input, shape index: {}]   ;;  %s1057_s4 = inlined_call_operand.hbm [shape: f32[32,32], index: 4, kind: input, shape index: {}]   ;;  %s1058_s5 = inlined_call_operand.hbm [shape: f32[64,128], index: 5, kind: input, shape index: {}]   ;;  %s1059_s6 = inlined_call_operand.hbm [shape: f32[32,128], index: 6, kind: input, shape index: {}]   ;;  %s1060_s7 = inlined_call_operand.vmem [shape: f32[4,128], index: 7, kind: input, shape index: {}]   ;;  %s1061_s8 = inlined_call_operand.hbm [shape: f32[2,128], index: 8, kind: output, shape index: {0}]   ;;  %s1062_s9 = inlined_call_operand.hbm [shape: f32[2,32], index: 9, kind: output, shape index: {1}, may-alias: {1,9}]   ;;  %s1063_s10 = inlined_call_operand.hbm [shape: f32[2,32], index: 10, kind: output, shape index: {2}, may-alias: {2,10}]  }
   0x1   :  { %17 = vsyncpa [#allocation6], 0 }
   0x2   :  { %18 = vsyncpa [#allocation9], 0 }
   0x3   :  { %19 = vsyncpa [#allocation4], 0 }
   0x4   :  { %20 = vsyncpa [#allocation13], 0  ;;  %s833_s13 = smov [#allocation5]   ;;  %s647_s17 = scalar_lea.hbm %s1055_s2, 32 }
   0x5   :  { %s39_s14 = sshll.u32 %s833_s13, 4  ;;  %p648_p0 = scmp.ne.s32.totalorder %s1055_s2, %s647_s17  ;;  %s40_s14 = int_to_ptr.vmem [resolvable:$true] %s39_s14 }
   0x6   :  { %p651_p1 = scmp.lt.u32.totalorder %s647_s17, %s1055_s2 }
   0x8   :  { %p653_p2 = pnand %p651_p1, %p648_p0 }
   0xa   :  { %656 = shalt.err (!%p653_p2)
}
   0xb   :  { %s657_s22 = scalar_lea.vmem %s40_s14, 32  ;;  %p662_p4 = scmp.lt.s32.totalorder %s40_s14, %s40_s14 }
   0xc   :  { %p658_p3 = scmp.ne.s32.totalorder %s40_s14, %s657_s22  ;;  %p663_p5 = scmp.lt.s32.totalorder %s657_s22, %s657_s22 }
   0xe   :  { %p664_p6 = por %p663_p5, %p662_p4 }
  0x10   :  { %p665_p7 = pnand %p664_p6, %p658_p3 }
  0x12   :  { %668 = shalt.err (!%p665_p7)
}
  0x13   :  { %42 = dma.hbm_to_vmem [thread:$0]  %s1055_s2, 32, %s40_s14, [#allocation6]  }
  0x14   :  { %s834_s25 = smov [#allocation8]   ;;  %s835_s27 = smov [#allocation2]  }
  0x15   :  { %s62_s26 = sshll.u32 %s834_s25, 4  ;;  %s29_s28 = sshll.u32 %s835_s27, 4  ;;  %s63_s26 = int_to_ptr.vmem [resolvable:$true] %s62_s26  ;;  %s30_s28 = int_to_ptr.vmem [resolvable:$true] %s29_s28 }
  0x16   :  { %s669_s11 = scalar_lea.hbm %s1058_s5, 1024 }
  0x17   :  { %p670_p8 = scmp.ne.s32.totalorder %s1058_s5, %s669_s11  ;;  %p673_p9 = scmp.lt.u32.totalorder %s669_s11, %s1058_s5 }
  0x19   :  { %p675_p10 = pnand %p673_p9, %p670_p8 }
  0x1b   :  { %678 = shalt.err (!%p675_p10)
}
  0x1c   :  { %s679_s2 = scalar_lea.vmem %s63_s26, 1024  ;;  %p684_p12 = scmp.lt.s32.totalorder %s63_s26, %s63_s26 }
  0x1d   :  { %p680_p11 = scmp.ne.s32.totalorder %s63_s26, %s679_s2  ;;  %p685_p13 = scmp.lt.s32.totalorder %s679_s2, %s679_s2 }
  0x1f   :  { %p686_p0 = por %p685_p13, %p684_p12 }
  0x21   :  { %p687_p1 = pnand %p686_p0, %p680_p11 }
  0x23   :  { %690 = shalt.err (!%p687_p1)
}
  0x24   :  { %s836_s14 = smov 128   ;;  %s837_s17 = smov 8  }
  0x25   :  { %68 = dma.hbm_to_vmem [thread:$0]  %s1058_s5, 1024, %s63_s26, [#allocation9], %s836_s14, %s836_s14, %s837_s17  }
  0x26   :  { %s691_s22 = scalar_lea.hbm %s1054_s1, 32 }
  0x27   :  { %p692_p2 = scmp.ne.s32.totalorder %s1054_s1, %s691_s22  ;;  %p695_p3 = scmp.lt.u32.totalorder %s691_s22, %s1054_s1 }
  0x29   :  { %p697_p4 = pnand %p695_p3, %p692_p2 }
  0x2b   :  { %700 = shalt.err (!%p697_p4)
}
  0x2c   :  { %s701_s29 = scalar_lea.vmem %s30_s28, 32  ;;  %p706_p6 = scmp.lt.s32.totalorder %s30_s28, %s30_s28 }
  0x2d   :  { %p702_p5 = scmp.ne.s32.totalorder %s30_s28, %s701_s29  ;;  %p707_p7 = scmp.lt.s32.totalorder %s701_s29, %s701_s29 }
  0x2f   :  { %p708_p8 = por %p707_p7, %p706_p6 }
  0x31   :  { %p709_p9 = pnand %p708_p8, %p702_p5 }
  0x33   :  { %712 = shalt.err (!%p709_p9)
}
  0x34   :  { %32 = dma.hbm_to_vmem [thread:$0]  %s1054_s1, 32, %s30_s28, [#allocation3]  }
  0x35   :  { %s838_s30 = smov [#allocation7]   ;;  %s839_s12 = smov [#allocation10]  }
  0x36   :  { %s50_s11 = sshll.u32 %s838_s30, 4  ;;  %s74_s13 = sshll.u32 %s839_s12, 4  ;;  %s51_s11 = int_to_ptr.vmem [resolvable:$true] %s50_s11  ;;  %s75_s13 = int_to_ptr.vmem [resolvable:$true] %s74_s13 }
  0x37   :  { %s713_s2 = scalar_lea.hbm %s1057_s4, 512 }
  0x38   :  { %p714_p10 = scmp.ne.s32.totalorder %s1057_s4, %s713_s2  ;;  %p717_p11 = scmp.lt.u32.totalorder %s713_s2, %s1057_s4 }
  0x3a   :  { %p719_p12 = pnand %p717_p11, %p714_p10 }
  0x3c   :  { %722 = shalt.err (!%p719_p12)
}
  0x3d   :  { %s723_s1 = scalar_lea.vmem %s51_s11, 512  ;;  %p728_p0 = scmp.lt.s32.totalorder %s51_s11, %s51_s11 }
  0x3e   :  { %p724_p13 = scmp.ne.s32.totalorder %s51_s11, %s723_s1  ;;  %p729_p1 = scmp.lt.s32.totalorder %s723_s1, %s723_s1 }
  0x40   :  { %p730_p2 = por %p729_p1, %p728_p0 }
  0x42   :  { %p731_p3 = pnand %p730_p2, %p724_p13 }
  0x44   :  { %734 = shalt.err (!%p731_p3)
}
  0x45   :  { %56 = dma.hbm_to_vmem [thread:$0]  %s1057_s4, 512, %s51_s11, [#allocation6], %s836_s14, %s836_s14, %s837_s17  }
  0x46   :  { %s735_s25 = scalar_lea.hbm %s1059_s6, 512 }
  0x47   :  { %p736_p4 = scmp.ne.s32.totalorder %s1059_s6, %s735_s25  ;;  %p739_p5 = scmp.lt.u32.totalorder %s735_s25, %s1059_s6 }
  0x49   :  { %p741_p6 = pnand %p739_p5, %p736_p4 }
  0x4b   :  { %744 = shalt.err (!%p741_p6)
}
  0x4c   :  { %s745_s30 = scalar_lea.vmem %s75_s13, 512  ;;  %p750_p8 = scmp.lt.s32.totalorder %s75_s13, %s75_s13 }
  0x4d   :  { %p746_p7 = scmp.ne.s32.totalorder %s75_s13, %s745_s30  ;;  %p751_p9 = scmp.lt.s32.totalorder %s745_s30, %s745_s30 }
  0x4f   :  { %p752_p10 = por %p751_p9, %p750_p8 }
  0x51   :  { %p753_p11 = pnand %p752_p10, %p746_p7 }
  0x53   :  { %756 = shalt.err (!%p753_p11)
}
  0x54   :  { %80 = dma.hbm_to_vmem [thread:$0]  %s1059_s6, 512, %s75_s13, [#allocation9], %s836_s14, %s836_s14, %s837_s17  }
  0x55   :  { %823 = dma.done.wait [#allocation3], 32  }
  0x56   :  { %824 = vsyncadd [#allocation3], 4294967264 }
  0x57   :  { %825 = dma.done.wait [#allocation6], 544  }
  0x58   :  { %826 = vsyncadd [#allocation6], 4294966752 }
  0x59   :  { %827 = dma.done.wait [#allocation9], 1536  }
  0x5a   :  { %828 = vsyncadd [#allocation9], 4294965760  ;;  %v840_v0 = vmov 0.0|0.0   ;;  %vm841_vm0 = vmmov 0   ;;  %v842_v1 = vmov 0.0   ;;  %v102_v2 = vld [vmem:[%s1056_s3] sm:$0xff]  ;;  %v104_v22 = vlaneseq }
  0x5b   :  { %596 = vmatprep.subr.bf16.mxu0 %v840_v0  ;;  %552 = vmatprep.mubr.msk.f32.mxu0 %vm841_vm0, %v842_v1  ;;  %v103_v3 = vld [vmem:[%s1056_s3 + $0x8] sm:$0xff]  ;;  %v98_v8 = vld [vmem:[%s1053_s0] sm:$0x3]  ;;  %vm108_vm1 = vcmask 130048   ;;  %v185_v9 = vld [vmem:[#allocation7 + $0x10] sm:$0xff]  ;;  %s843_s3 = smov 32  }
  0x5c   :  { %599 = vmatprep.subr.bf16.mxu1 %v840_v0  ;;  %563 = vmatprep.mubr.msk.f32.mxu1 %vm841_vm0, %v842_v1  ;;  %v597_v4 = vpack.c.bf16 %v103_v3, %v102_v2  ;;  %v183_v5 = vld [vmem:[#allocation7] sm:$0xff]  ;;  %v184_v6 = vld [vmem:[#allocation7 + $0x8] sm:$0xff]  ;;  %v186_v10 = vld [vmem:[#allocation7 + $0x18] sm:$0xff]  ;;  %v994_v23 = vshrl.u32 %v104_v22, 7  ;;  %vm191_vm2 = vcmask 261120   ;;  %vm283_vm3 = vcmask 523264  }
  0x5d   :  { %v600_v7 = vpack.c.bf16 %v184_v6, %v183_v5  ;;  %v603_v11 = vpack.c.bf16 %v186_v10, %v185_v9  ;;  %v99_v12 = vld [vmem:[#allocation2] sm:$0x3]  ;;  %v271_v13 = vld [vmem:[#allocation8] sm:$0xff]  ;;  %v272_v14 = vld [vmem:[#allocation8 + $0x8] sm:$0xff]  ;;  %s845_s2 = smov 96   ;;  %vm470_vm4 = vcmask 254976  }
  0x5e   :  { %598 = vmatpush3.bf16.msra.mxu0 %v597_v4  ;;  %267 = vrot.lane.b32.xlu0 %v99_v12, %s843_s3  ;;  %v606_v15 = vpack.c.bf16 %v272_v14, %v271_v13  ;;  %v273_v16 = vld [vmem:[#allocation8 + $0x10] sm:$0xff]  ;;  %v274_v17 = vld [vmem:[#allocation8 + $0x18] sm:$0xff]  ;;  %v275_v19 = vld [vmem:[#allocation8 + $0x20] sm:$0xff]  ;;  %v106_v24 = vsub.s32 0, %v994_v23  ;;  %v189_v35 = vsub.s32 1, %v994_v23  ;;  %v281_v43 = vsub.s32 2, %v994_v23 }
  0x5f   :  { %601 = vmatpush3.bf16.msra.mxu1 %v600_v7  ;;  %605 = vmatprep.subr.bf16.mxu0 %v840_v0  ;;  %v609_v18 = vpack.c.bf16 %v274_v17, %v273_v16  ;;  %v276_v20 = vld [vmem:[#allocation8 + $0x28] sm:$0xff]  ;;  %v1000_v25 = vld [vmem:[%s1060_s7] sm:$0xf]  ;;  %v277_v31 = vld [vmem:[#allocation8 + $0x30] sm:$0xff]  ;;  %s844_s7 = smov 64   ;;  %s846_s18 = smov [#allocation12]  }
  0x60   :  { %602 = vmatprep.subr.bf16.mxu1 %v840_v0  ;;  %v612_v21 = vpack.c.bf16 %v276_v20, %v275_v19  ;;  %v107_v26 = vrot.slane %v1000_v25, %v106_v24  ;;  %v278_v32 = vld [vmem:[#allocation8 + $0x38] sm:$0xff]  ;;  %v190_v36 = vrot.slane %v1000_v25, %v189_v35  ;;  %v282_v44 = vrot.slane %v1000_v25, %v281_v43  ;;  %v385_v59 = vld [vmem:[#allocation10] sm:$0xff]  ;;  %v386_v60 = vld [vmem:[#allocation10 + $0x8] sm:$0xff]  ;;  %s493_s19 = sshll.u32 %s846_s18, 4  ;;  %s494_s19 = int_to_ptr.vmem [resolvable:$true] %s493_s19 }
  0x61   :  { %553 = vmatmul.mubr.msk.f32.vlgmr.msra.gmra.mrb[0].mxu0 %vm108_vm1, %v98_v8  ;;  %v615_v33 = vpack.c.bf16 %v278_v32, %v277_v31  ;;  %v100_v34 = vld [vmem:[#allocation5] sm:$0x3]  ;;  %v387_v61 = vld [vmem:[#allocation10 + $0x10] sm:$0xff]  ;;  %v618_v62 = vpack.c.bf16 %v386_v60, %v385_v59  ;;  %s757_s20 = scalar_lea.vmem %s494_s19, 32  ;;  %p762_p13 = scmp.lt.s32.totalorder %s494_s19, %s494_s19 }
  0x62   :  { %582 = vmatprep.mubr.msk.f32.mxu0 %vm841_vm0, %v842_v1  ;;  %607 = vmatpush3.bf16.msra.mxu0 %v606_v15  ;;  %v388_v63 = vld [vmem:[#allocation10 + $0x18] sm:$0xff]  ;;  %p758_p12 = scmp.ne.s32.totalorder %s494_s19, %s757_s20  ;;  %p763_p0 = scmp.lt.s32.totalorder %s757_s20, %s757_s20 }
  0x63   :  { %604 = vmatpush3.bf16.msra.mxu1 %v603_v11  ;;  %608 = vmatprep.subr.bf16.mxu0 %v840_v0 }
  0x64   :  { %617 = vmatprep.subr.bf16.mxu1 %v840_v0  ;;  %365 = vrot.lane.b32.xlu1 %v100_v34, %s843_s3  ;;  %p764_p1 = por %p763_p0, %p762_p13 }
  0x66   :  { %610 = vmatpush3.bf16.msra.mxu0 %v609_v18  ;;  %p765_p2 = pnand %p764_p1, %p758_p12 }
  0x67   :  { %611 = vmatprep.subr.bf16.mxu0 %v840_v0 }
  0x6a   :  { %613 = vmatpush3.bf16.msra.mxu0 %v612_v21 }
  0x6b   :  { %614 = vmatprep.subr.bf16.mxu0 %v840_v0 }
  0x6e   :  { %616 = vmatpush3.bf16.msra.mxu0 %v615_v33 }
  0xd0   :  { %v268_v40 = vpop.permute.xlu0 %267 }
  0xd6   :  { %v366_v55 = vpop.permute.xlu1 %365 }
 0x134   :  { %v178_v27 = vpop.f32.mrb[0].mxu0 }
 0x135   :  { %v179_v28 = vadd.f32 %v178_v27, %v107_v26  ;;  %v554_v29 = vpop.f32.mrb[1].mxu0 }
 0x137   :  { %v182_v30 = vmax.f32 %v179_v28, 0.0 }
 0x139   :  { %564 = vmatmul.mubr.msk.f32.vlgmr.msra.gmra.mrb[0].mxu1 %vm191_vm2, %v182_v30 }
 0x13a   :  { %593 = vmatprep.mubr.msk.f32.mxu1 %vm841_vm0, %v842_v1  ;;  %619 = vmatpush3.bf16.msra.mxu1 %v618_v62  ;;  %v621_v1 = vpack.c.bf16 %v388_v63, %v387_v61 }
 0x13b   :  { %620 = vmatprep.subr.bf16.mxu1 %v840_v0 }
 0x13e   :  { %622 = vmatpush3.bf16.msra.mxu1 %v621_v1 }
 0x20c   :  { %v261_v37 = vpop.f32.mrb[0].mxu1 }
 0x20d   :  { %v262_v38 = vadd.f32 %v261_v37, %v190_v36  ;;  %v565_v39 = vpop.f32.mrb[1].mxu1 }
 0x20f   :  { %v265_v41 = vmax.f32 %v262_v38, 0.0 }
 0x211   :  { %v270_v42 = vsel %vm191_vm2, %v265_v41, %v268_v40 }
 0x212   :  { %583 = vmatmul.mubr.msk.f32.vlgmr.msra.gmra.mrb[2].mxu0 %vm283_vm3, %v270_v42 }
 0x2e5   :  { %v353_v45 = vpop.f32.mrb[2].mxu0 }
 0x2e6   :  { %v354_v46 = vadd.f32 %v353_v45, %v282_v44  ;;  %v584_v47 = vpop.f32.mrb[3].mxu0 }
 0x2e8   :  { %639 = vtanh.f32 %v354_v46  ;;  %v524_v49 = vmul.f32 -1.442695, %v354_v46 }
 0x2ea   :  { %641 = vpow2.f32 %v524_v49 }
 0x2f2   :  { %v640_v48 = vpop.eup %639 }
 0x2f3   :  { %370 = vrot.lane.b32.xlu0 %v640_v48, %s844_s7 }
 0x2f4   :  { %v642_v50 = vpop.eup %641 }
 0x2f5   :  { %v360_v51 = vadd.f32 1.0, %v642_v50 }
 0x2f7   :  { %643 = vrcp.f32 %v360_v51 }
 0x301   :  { %v644_v52 = vpop.eup %643 }
 0x302   :  { %v368_v56 = vmul.f32 %v644_v52, %v366_v55 }
 0x365   :  { %v371_v53 = vpop.permute.xlu0 %370 }
 0x366   :  { %v373_v54 = vmul.f32 %v644_v52, %v371_v53 }
 0x368   :  { %375 = vrot.lane.b32.xlu1 %v373_v54, %s843_s3 }
 0x3da   :  { %v376_v57 = vpop.permute.xlu1 %375 }
 0x3db   :  { %v378_v58 = vadd.f32 %v376_v57, %v368_v56 }
 0x3dd   :  { %645 = vtanh.f32 %v378_v58 }
 0x3e7   :  { %v646_v2 = vpop.eup %645 }
 0x3e8   :  { %381 = vrot.lane.b32.xlu0 %v646_v2, %s844_s7 }
 0x3ec   :  { %473 = vrot.lane.b32.xlu0 %v378_v58, %s845_s2 }
 0x45a   :  { %v382_v3 = vpop.permute.xlu0 %381 }
 0x45b   :  { %v384_v4 = vmul.f32 %v644_v52, %v382_v3 }
 0x45d   :  { %394 = vrot.lane.b32.xlu1 %v384_v4, %s843_s3 }
 0x45e   :  { %v474_v5 = vpop.permute.xlu0 %473 }
 0x45f   :  { %476 = vst.msk [vmem:[#allocation14] sm:$0x3] %vm470_vm4, %v474_v5 }
 0x4cf   :  { %v395_v6 = vpop.permute.xlu1 %394 }
 0x4d0   :  { %471 = vst.msk [vmem:[#allocation12] sm:$0x3] %vm470_vm4, %v395_v6  ;;  %594 = vmatmul.mubr.msk.f32.vlgmr.msra.gmra.mrb[2].mxu1 %vm191_vm2, %v395_v6 }
 0x4d1   :  { %768 = shalt.err (!%p765_p2)
}
 0x4d2   :  { %s769_s28 = scalar_lea.hbm %s1062_s9, 32 }
 0x4d3   :  { %p770_p3 = scmp.ne.s32.totalorder %s1062_s9, %s769_s28  ;;  %p773_p4 = scmp.lt.u32.totalorder %s769_s28, %s1062_s9 }
 0x4d5   :  { %p775_p5 = pnand %p773_p4, %p770_p3 }
 0x4d7   :  { %778 = shalt.err (!%p775_p5)
}
 0x4d8   :  { %496 = dma.vmem_to_hbm [thread:$0]  %s494_s19, 32, %s1062_s9, [#allocation13]  }
 0x4d9   :  { %s847_s5 = smov [#allocation14]  }
 0x4da   :  { %s503_s26 = sshll.u32 %s847_s5, 4  ;;  %s504_s26 = int_to_ptr.vmem [resolvable:$true] %s503_s26 }
 0x4db   :  { %s779_s30 = scalar_lea.vmem %s504_s26, 32  ;;  %p784_p7 = scmp.lt.s32.totalorder %s504_s26, %s504_s26 }
 0x4dc   :  { %p780_p6 = scmp.ne.s32.totalorder %s504_s26, %s779_s30  ;;  %p785_p8 = scmp.lt.s32.totalorder %s779_s30, %s779_s30 }
 0x4de   :  { %p786_p9 = por %p785_p8, %p784_p7 }
 0x4e0   :  { %p787_p10 = pnand %p786_p9, %p780_p6 }
 0x4e2   :  { %790 = shalt.err (!%p787_p10)
}
 0x4e3   :  { %s791_s12 = scalar_lea.hbm %s1063_s10, 32 }
 0x4e4   :  { %p792_p11 = scmp.ne.s32.totalorder %s1063_s10, %s791_s12  ;;  %p795_p12 = scmp.lt.u32.totalorder %s791_s12, %s1063_s10 }
 0x4e6   :  { %p797_p13 = pnand %p795_p12, %p792_p11 }
 0x4e8   :  { %800 = shalt.err (!%p797_p13)
}
 0x4e9   :  { %506 = dma.vmem_to_hbm [thread:$0]  %s504_s26, 32, %s1063_s10, [#allocation13]   ;;  %v391_v0 = vsub.s32 3, %v994_v23 }
 0x4ea   :  { %s848_s3 = smov [#allocation11]  }
 0x4eb   :  { %v392_v7 = vrot.slane %v1000_v25, %v391_v0  ;;  %s483_s0 = sshll.u32 %s848_s3, 4  ;;  %s484_s0 = int_to_ptr.vmem [resolvable:$true] %s483_s0 }
 0x4ec   :  { %s801_s16 = scalar_lea.vmem %s484_s0, 32  ;;  %p806_p1 = scmp.lt.s32.totalorder %s484_s0, %s484_s0 }
 0x4ed   :  { %p802_p0 = scmp.ne.s32.totalorder %s484_s0, %s801_s16  ;;  %p807_p2 = scmp.lt.s32.totalorder %s801_s16, %s801_s16 }
 0x4ef   :  { %p808_p3 = por %p807_p2, %p806_p1 }
 0x4f1   :  { %p809_p4 = pnand %p808_p3, %p802_p0 }
 0x5a3   :  { %v464_v8 = vpop.f32.mrb[2].mxu1 }
 0x5a4   :  { %v465_v9 = vadd.f32 %v464_v8, %v392_v7  ;;  %v595_v10 = vpop.f32.mrb[3].mxu1 }
 0x5a6   :  { %468 = vst [vmem:[#allocation11] sm:$0x3] %v465_v9 }
 0x5a7   :  { %812 = shalt.err (!%p809_p4)
}
 0x5a8   :  { %s813_s2 = scalar_lea.hbm %s1061_s8, 32 }
 0x5a9   :  { %p814_p5 = scmp.ne.s32.totalorder %s1061_s8, %s813_s2  ;;  %p817_p6 = scmp.lt.u32.totalorder %s813_s2, %s1061_s8 }
 0x5ab   :  { %p819_p7 = pnand %p817_p6, %p814_p5 }
 0x5ad   :  { %822 = shalt.err (!%p819_p7)
}
 0x5ae   :  { %486 = dma.vmem_to_hbm [thread:$0]  %s484_s0, 32, %s1061_s8, [#allocation4]  }
 0x5af   :  { %829 = dma.done.wait [#allocation4], 32  }
 0x5b0   :  { %830 = vsyncadd [#allocation4], 4294967264 }
 0x5b1   :  { %831 = dma.done.wait [#allocation13], 64  }
 0x5b2   :  { %832 = vsyncadd [#allocation13], 4294967232 }
 0x5b3   :  { %516 = vsyncpa [#allocation3], 1 }
 0x5b4   :  { %517 = vsyncpa [#allocation6], 1 }
 0x5b5   :  { %518 = vsyncpa [#allocation9], 1 }
 0x5b6   :  { %519 = vsyncpa [#allocation4], 1 }
 0x5b7   :  { %520 = vsyncpa [#allocation13], 1 }

</bundles_post_ra>
